<compile_context>
chip_gen: v7x
topology: tpu7x:2x2x1
jax: 0.10.0
libtpu: 0.0.40
codegen_flags: <defaults>
</compile_context>

<pallas_src>
import jax
import jax.numpy as jnp
from jax.experimental import pallas as pl
from jax.experimental.pallas import tpu as pltpu

# ---------------- problem sizes (small, consistent with the module) ----------------
INPUT_SIZE = 32
NHIDDEN = 16
N_CLUSTERS = 4
N_CLASSES = 2
N_DEMOV = 5
BATCH = 16

# Original 13 Linear layers (in, out) of the PyTorch module.
LAYER_DIMS = [
    # encoder
    (INPUT_SIZE, 128), (128, 64), (64, NHIDDEN),
    # decoder + linear_decoder_output
    (NHIDDEN, 64), (64, 128), (128, INPUT_SIZE),
    # linear_classifier_c
    (NHIDDEN, 128), (128, 64), (64, 32), (32, 16), (16, N_CLUSTERS),
    # linear_regression_c, linear_regression_demov
    (N_CLUSTERS, N_CLASSES), (N_DEMOV, N_CLASSES),
]

# --------- effective layer table consumed by the kernel (128-lane slab) ------------
# Layers 11: fused [softmax(c)(4) | demov(5) | zero-pad(7)] -> n_classes (16 in-rows).
EFF_DIMS = [
    (INPUT_SIZE, 128),   # 0  encoder L0
    (128, 64),           # 1  encoder L1
    (64, NHIDDEN),       # 2  z_layer
    (NHIDDEN, 128),      # 3  classifier L0
    (NHIDDEN, 64),       # 4  decoder L0
    (64, 128),           # 5  decoder L1
    (128, INPUT_SIZE),   # 6  linear_decoder_output
    (128, 64),           # 7  classifier L1
    (64, 32),            # 8  classifier L2
    (32, 16),            # 9  classifier L3
    (16, N_CLUSTERS),    # 10 classifier out (cna)
    (16, N_CLASSES),     # 11 fused regression (only first 9 rows used, rest zero)
]
N_EFF = len(EFF_DIMS)
N_EFF_PAD = 16            # bias-slab rows (padded, f32)
LANES = 128               # weight/bias slab lane width


def _round16(n):          # bf16 packs 16 rows per sublane-pair; keep offsets aligned
    return (n + 15) // 16 * 16


EFF_OFFS = []
_off = 0
for _din, _dout in EFF_DIMS:
    EFF_OFFS.append(_off)
    _off += _round16(_din)
TOTAL_ROWS = _off          # 704 rows -> 704 x 128 bf16 = 176 KB weight DMA

# packed output slab layout: [enc(16) | dec(32) | cna(4) | outcome(2) | zero-pad]
OUT_USED = NHIDDEN + INPUT_SIZE + N_CLUSTERS + N_CLASSES   # 54
OUT_W = 128                                                # lane-dense, unmasked stores


# ---------------------------------- kernel -----------------------------------------
def model2_kernel(x_ref, demov_ref, w_ref, b_ref, out_ref):
    def lin(h, li):
        off = EFF_OFFS[li]
        din, dout = EFF_DIMS[li]
        w = w_ref[off:off + din, 0:dout]            # static slice of the bf16 slab
        b = b_ref[li:li + 1, 0:dout]                # (1, dout) f32, broadcast over batch
        # bf16 only at the MXU operands; f32 accumulation; f32 bias add.
        return jnp.dot(h.astype(jnp.bfloat16), w,
                       preferred_element_type=jnp.float32) + b

    x = x_ref[...]                                   # (B, INPUT_SIZE) f32
    demov = demov_ref[...]                           # (B, N_DEMOV)    f32
    B = x.shape[0]

    # ----- encoder -----
    h = jnp.maximum(lin(x, 0), 0.0)
    h = jnp.maximum(lin(h, 1), 0.0)
    z = lin(h, 2)                                    # encoded_x (B, NHIDDEN)

    # ----- two small dots on the shared z input (was one 192-lane fused dot) -----
    c = jnp.maximum(lin(z, 3), 0.0)                  # classifier L0 (B, 128)
    d = jnp.maximum(lin(z, 4), 0.0)                  # decoder L0    (B, 64)

    # ----- decoder tail + linear_decoder_output -----
    d = jnp.maximum(lin(d, 5), 0.0)
    dec = lin(d, 6)                                  # decoded_x (B, INPUT_SIZE)

    # ----- classifier tail -----
    c = jnp.maximum(lin(c, 7), 0.0)
    c = jnp.maximum(lin(c, 8), 0.0)
    c = jnp.maximum(lin(c, 9), 0.0)
    cna = lin(c, 10)                                 # output_c_no_activate (B, 4)

    # softmax along dim=1 (features), f32, EUP reciprocal
    m = jnp.max(cna, axis=1, keepdims=True)
    e = jnp.exp(cna - m)
    c_soft = e * pl.reciprocal(jnp.sum(e, axis=1, keepdims=True), approx=True)

    # ----- fused logistic-regression outcome: [c_soft | demov | 0-pad] @ [Wc ; Wv ; 0] -----
    reg_in = jnp.concatenate(
        [c_soft, demov, jnp.zeros((B, 16 - N_CLUSTERS - N_DEMOV), jnp.float32)], axis=1)
    cpv = lin(reg_in, 11)                            # (B, N_CLASSES)
    outcome = 1.0 / (1.0 + jnp.exp(-cpv))

    # ----- single lane-dense output slab -----
    pad = jnp.zeros((B, OUT_W - OUT_USED), jnp.float32)
    out_ref[...] = jnp.concatenate([z, dec, cna, outcome, pad], axis=1)


# --------------------------------- wrapper ------------------------------------------
def pack_params(params):
    """Pack the 13 original (w, b) pairs into one bf16 weight slab + one f32 bias slab."""
    def wb(i):
        return params[2 * i], params[2 * i + 1]

    w11, b11 = wb(11)   # linear_regression_c     (4, 2)
    w12, b12 = wb(12)   # linear_regression_demov (5, 2)

    eff = [
        wb(0), wb(1), wb(2),                                   # encoder L0, L1, z_layer
        wb(6),                                                 # classifier L0 (16,128)
        wb(3),                                                 # decoder L0    (16,64)
        wb(4), wb(5),                                          # decoder L1, decoder_output
        wb(7), wb(8), wb(9), wb(10),                           # classifier L1..out
        (jnp.concatenate([w11, w12], axis=0), b11 + b12),      # fused regression (9,2)
    ]

    wslab = jnp.zeros((TOTAL_ROWS, LANES), jnp.float32)        # unused rows stay zero
    bslab = jnp.zeros((N_EFF_PAD, LANES), jnp.float32)
    for li, (w, b) in enumerate(eff):
        off = EFF_OFFS[li]
        din, dout = w.shape
        wslab = wslab.at[off:off + din, :dout].set(w)
        bslab = bslab.at[li, :dout].set(b.reshape(-1))
    return wslab.astype(jnp.bfloat16), bslab


@jax.jit
def model2_forward(x, demov, wslab, bslab):
    B = x.shape[0]
    vmem = pl.BlockSpec(memory_space=pltpu.MemorySpace.VMEM)

    # No grid: single invocation, whole problem VMEM-resident, no software-pipeline
    # prologue/epilogue and no double-buffering of the weight slab.
    packed = pl.pallas_call(
        model2_kernel,
        out_shape=jax.ShapeDtypeStruct((B, OUT_W), jnp.float32),
        in_specs=[vmem, vmem, vmem, vmem],
        out_specs=vmem,
    )(x, demov, wslab, bslab)

    # split the lane-dense slab back into the four module outputs
    o0 = NHIDDEN
    o1 = o0 + INPUT_SIZE
    o2 = o1 + N_CLUSTERS
    o3 = o2 + N_CLASSES
    return (packed[:, 0:o0], packed[:, o0:o1],
            packed[:, o1:o2], packed[:, o2:o3])


# ----------------------------- deterministic params ---------------------------------
def make_params(key):
    params = []
    for li, (din, dout) in enumerate(LAYER_DIMS):
        kw, kb = jax.random.split(jax.random.fold_in(key, li))
        w = jax.random.uniform(kw, (din, dout), jnp.float32, -0.1, 0.1)
        b = jax.random.uniform(kb, (1, dout), jnp.float32, -0.1, 0.1)
        params += [w, b]
    return params


# ---------------------------------- reference ---------------------------------------
def reference_forward(x, demov, params, matmul_dtype=jnp.float32):
    """Pure-JAX reference.  matmul_dtype=bf16 mirrors the kernel's mixed precision
    exactly (bf16 dot operands, f32 accumulation, f32 elementwise)."""
    def lin(h, i):
        w = params[2 * i].astype(matmul_dtype)
        b = params[2 * i + 1]
        return jnp.dot(h.astype(matmul_dtype), w,
                       preferred_element_type=jnp.float32) + b

    h = jax.nn.relu(lin(x, 0))
    h = jax.nn.relu(lin(h, 1))
    z = lin(h, 2)
    d = jax.nn.relu(lin(z, 3))
    d = jax.nn.relu(lin(d, 4))
    dec = lin(d, 5)
    c = jax.nn.relu(lin(z, 6))
    c = jax.nn.relu(lin(c, 7))
    c = jax.nn.relu(lin(c, 8))
    c = jax.nn.relu(lin(c, 9))
    cna = lin(c, 10)
    c_soft = jax.nn.softmax(cna, axis=1)
    outcome = jax.nn.sigmoid(lin(c_soft, 11) + lin(demov, 12))
    return z, dec, cna, outcome


# ------------------------------------ main -------------------------------------------
if __name__ == "__main__":
    key = jax.random.PRNGKey(0)
    kx, kd, kp = jax.random.split(key, 3)

    x = jax.random.normal(kx, (BATCH, INPUT_SIZE), jnp.float32)
    demov = jax.random.normal(kd, (BATCH, N_DEMOV), jnp.float32)
    params = make_params(kp)
    wslab, bslab = pack_params(params)

    outs = jax.block_until_ready(model2_forward(x, demov, wslab, bslab))

    # (1) tight check against a reference with identical mixed precision
    #     (bf16 MXU operands / f32 accumulate) — verifies the kernel's math.
    refs_mixed = reference_forward(x, demov, params, matmul_dtype=jnp.bfloat16)
    # (2) loose check against the full-f32 original-module reference — bounds the
    #     drift introduced by bf16 weight storage.
    refs_f32 = reference_forward(x, demov, params, matmul_dtype=jnp.float32)

    for o, rm, rf in zip(outs, refs_mixed, refs_f32):
        assert o.shape == rm.shape and o.dtype == rm.dtype
        assert jnp.max(jnp.abs(o - rm)) < 2e-3, "mismatch vs mixed-precision reference"
        assert jnp.max(jnp.abs(o - rf)) < 5e-2, "bf16-weight drift vs f32 reference too large"

    print("KERNEL_OK")
</pallas_src>

<mosaic_0001>
module attributes {stable_mosaic.version = 11 : i64} {
  func.func @model2_kernel(%arg0: memref<16x32xf32, #tpu.memory_space<vmem>>, %arg1: memref<16x5xf32, #tpu.memory_space<vmem>>, %arg2: memref<704x128xbf16, #tpu.memory_space<vmem>>, %arg3: memref<16x128xf32, #tpu.memory_space<vmem>>, %arg4: memref<16x128xf32, #tpu.memory_space<vmem>>) attributes {dimension_semantics = [], scalar_prefetch = 0 : i64, scratch_operands = 0 : i64, tpu.core_type = #tpu.core_type<tc>} {
    %c0 = arith.constant 0 : index
    %c0_0 = arith.constant 0 : index
    %0 = vector.load %arg0[%c0, %c0_0] : memref<16x32xf32, #tpu.memory_space<vmem>>, vector<16x32xf32>
    %c0_1 = arith.constant 0 : index
    %c0_2 = arith.constant 0 : index
    %1 = vector.load %arg1[%c0_1, %c0_2] : memref<16x5xf32, #tpu.memory_space<vmem>>, vector<16x5xf32>
    %c0_3 = arith.constant 0 : index
    %c0_4 = arith.constant 0 : index
    %2 = vector.load %arg2[%c0_3, %c0_4] : memref<704x128xbf16, #tpu.memory_space<vmem>>, vector<32x128xbf16>
    %c0_5 = arith.constant 0 : index
    %c0_6 = arith.constant 0 : index
    %3 = vector.load %arg3[%c0_5, %c0_6] : memref<16x128xf32, #tpu.memory_space<vmem>>, vector<1x128xf32>
    %4 = arith.truncf %0 : vector<16x32xf32> to vector<16x32xbf16>
    %cst = arith.constant dense<0.000000e+00> : vector<16x128xf32>
    %5 = tpu.matmul %4, %2, %cst {dimension_numbers = #tpu.dot_dimension_numbers<[1], [0], [0], [1], [0, 0, 1, 1], [], []>} : vector<16x32xbf16>, vector<32x128xbf16>, vector<16x128xf32> -> vector<16x128xf32>
    %6 = vector.broadcast %3 : vector<1x128xf32> to vector<16x128xf32>
    %7 = arith.addf %5, %6 : vector<16x128xf32>
    %cst_7 = arith.constant 0.000000e+00 : f32
    %8 = vector.broadcast %cst_7 : f32 to vector<16x128xf32>
    %9 = arith.maximumf %7, %8 : vector<16x128xf32>
    %c32 = arith.constant 32 : index
    %c0_8 = arith.constant 0 : index
    %10 = vector.load %arg2[%c32, %c0_8] : memref<704x128xbf16, #tpu.memory_space<vmem>>, vector<128x64xbf16>
    %c1 = arith.constant 1 : index
    %c0_9 = arith.constant 0 : index
    %11 = vector.load %arg3[%c1, %c0_9] : memref<16x128xf32, #tpu.memory_space<vmem>>, vector<1x64xf32>
    %12 = arith.truncf %9 : vector<16x128xf32> to vector<16x128xbf16>
    %cst_10 = arith.constant dense<0.000000e+00> : vector<16x64xf32>
    %13 = tpu.matmul %12, %10, %cst_10 {dimension_numbers = #tpu.dot_dimension_numbers<[1], [0], [0], [1], [0, 0, 1, 1], [], []>} : vector<16x128xbf16>, vector<128x64xbf16>, vector<16x64xf32> -> vector<16x64xf32>
    %14 = vector.broadcast %11 : vector<1x64xf32> to vector<16x64xf32>
    %15 = arith.addf %13, %14 : vector<16x64xf32>
    %cst_11 = arith.constant 0.000000e+00 : f32
    %16 = vector.broadcast %cst_11 : f32 to vector<16x64xf32>
    %17 = arith.maximumf %15, %16 : vector<16x64xf32>
    %c160 = arith.constant 160 : index
    %c0_12 = arith.constant 0 : index
    %18 = vector.load %arg2[%c160, %c0_12] : memref<704x128xbf16, #tpu.memory_space<vmem>>, vector<64x16xbf16>
    %c2 = arith.constant 2 : index
    %c0_13 = arith.constant 0 : index
    %19 = vector.load %arg3[%c2, %c0_13] : memref<16x128xf32, #tpu.memory_space<vmem>>, vector<1x16xf32>
    %20 = arith.truncf %17 : vector<16x64xf32> to vector<16x64xbf16>
    %cst_14 = arith.constant dense<0.000000e+00> : vector<16x16xf32>
    %21 = tpu.matmul %20, %18, %cst_14 {dimension_numbers = #tpu.dot_dimension_numbers<[1], [0], [0], [1], [0, 0, 1, 1], [], []>} : vector<16x64xbf16>, vector<64x16xbf16>, vector<16x16xf32> -> vector<16x16xf32>
    %22 = vector.broadcast %19 : vector<1x16xf32> to vector<16x16xf32>
    %23 = arith.addf %21, %22 : vector<16x16xf32>
    %c224 = arith.constant 224 : index
    %c0_15 = arith.constant 0 : index
    %24 = vector.load %arg2[%c224, %c0_15] : memref<704x128xbf16, #tpu.memory_space<vmem>>, vector<16x128xbf16>
    %c3 = arith.constant 3 : index
    %c0_16 = arith.constant 0 : index
    %25 = vector.load %arg3[%c3, %c0_16] : memref<16x128xf32, #tpu.memory_space<vmem>>, vector<1x128xf32>
    %26 = arith.truncf %23 : vector<16x16xf32> to vector<16x16xbf16>
    %cst_17 = arith.constant dense<0.000000e+00> : vector<16x128xf32>
    %27 = tpu.matmul %26, %24, %cst_17 {dimension_numbers = #tpu.dot_dimension_numbers<[1], [0], [0], [1], [0, 0, 1, 1], [], []>} : vector<16x16xbf16>, vector<16x128xbf16>, vector<16x128xf32> -> vector<16x128xf32>
    %28 = vector.broadcast %25 : vector<1x128xf32> to vector<16x128xf32>
    %29 = arith.addf %27, %28 : vector<16x128xf32>
    %cst_18 = arith.constant 0.000000e+00 : f32
    %30 = vector.broadcast %cst_18 : f32 to vector<16x128xf32>
    %31 = arith.maximumf %29, %30 : vector<16x128xf32>
    %c240 = arith.constant 240 : index
    %c0_19 = arith.constant 0 : index
    %32 = vector.load %arg2[%c240, %c0_19] : memref<704x128xbf16, #tpu.memory_space<vmem>>, vector<16x64xbf16>
    %c4 = arith.constant 4 : index
    %c0_20 = arith.constant 0 : index
    %33 = vector.load %arg3[%c4, %c0_20] : memref<16x128xf32, #tpu.memory_space<vmem>>, vector<1x64xf32>
    %34 = arith.truncf %23 : vector<16x16xf32> to vector<16x16xbf16>
    %cst_21 = arith.constant dense<0.000000e+00> : vector<16x64xf32>
    %35 = tpu.matmul %34, %32, %cst_21 {dimension_numbers = #tpu.dot_dimension_numbers<[1], [0], [0], [1], [0, 0, 1, 1], [], []>} : vector<16x16xbf16>, vector<16x64xbf16>, vector<16x64xf32> -> vector<16x64xf32>
    %36 = vector.broadcast %33 : vector<1x64xf32> to vector<16x64xf32>
    %37 = arith.addf %35, %36 : vector<16x64xf32>
    %cst_22 = arith.constant 0.000000e+00 : f32
    %38 = vector.broadcast %cst_22 : f32 to vector<16x64xf32>
    %39 = arith.maximumf %37, %38 : vector<16x64xf32>
    %c256 = arith.constant 256 : index
    %c0_23 = arith.constant 0 : index
    %40 = vector.load %arg2[%c256, %c0_23] : memref<704x128xbf16, #tpu.memory_space<vmem>>, vector<64x128xbf16>
    %c5 = arith.constant 5 : index
    %c0_24 = arith.constant 0 : index
    %41 = vector.load %arg3[%c5, %c0_24] : memref<16x128xf32, #tpu.memory_space<vmem>>, vector<1x128xf32>
    %42 = arith.truncf %39 : vector<16x64xf32> to vector<16x64xbf16>
    %cst_25 = arith.constant dense<0.000000e+00> : vector<16x128xf32>
    %43 = tpu.matmul %42, %40, %cst_25 {dimension_numbers = #tpu.dot_dimension_numbers<[1], [0], [0], [1], [0, 0, 1, 1], [], []>} : vector<16x64xbf16>, vector<64x128xbf16>, vector<16x128xf32> -> vector<16x128xf32>
    %44 = vector.broadcast %41 : vector<1x128xf32> to vector<16x128xf32>
    %45 = arith.addf %43, %44 : vector<16x128xf32>
    %cst_26 = arith.constant 0.000000e+00 : f32
    %46 = vector.broadcast %cst_26 : f32 to vector<16x128xf32>
    %47 = arith.maximumf %45, %46 : vector<16x128xf32>
    %c320 = arith.constant 320 : index
    %c0_27 = arith.constant 0 : index
    %48 = vector.load %arg2[%c320, %c0_27] : memref<704x128xbf16, #tpu.memory_space<vmem>>, vector<128x32xbf16>
    %c6 = arith.constant 6 : index
    %c0_28 = arith.constant 0 : index
    %49 = vector.load %arg3[%c6, %c0_28] : memref<16x128xf32, #tpu.memory_space<vmem>>, vector<1x32xf32>
    %50 = arith.truncf %47 : vector<16x128xf32> to vector<16x128xbf16>
    %cst_29 = arith.constant dense<0.000000e+00> : vector<16x32xf32>
    %51 = tpu.matmul %50, %48, %cst_29 {dimension_numbers = #tpu.dot_dimension_numbers<[1], [0], [0], [1], [0, 0, 1, 1], [], []>} : vector<16x128xbf16>, vector<128x32xbf16>, vector<16x32xf32> -> vector<16x32xf32>
    %52 = vector.broadcast %49 : vector<1x32xf32> to vector<16x32xf32>
    %53 = arith.addf %51, %52 : vector<16x32xf32>
    %c448 = arith.constant 448 : index
    %c0_30 = arith.constant 0 : index
    %54 = vector.load %arg2[%c448, %c0_30] : memref<704x128xbf16, #tpu.memory_space<vmem>>, vector<128x64xbf16>
    %c7 = arith.constant 7 : index
    %c0_31 = arith.constant 0 : index
    %55 = vector.load %arg3[%c7, %c0_31] : memref<16x128xf32, #tpu.memory_space<vmem>>, vector<1x64xf32>
    %56 = arith.truncf %31 : vector<16x128xf32> to vector<16x128xbf16>
    %cst_32 = arith.constant dense<0.000000e+00> : vector<16x64xf32>
    %57 = tpu.matmul %56, %54, %cst_32 {dimension_numbers = #tpu.dot_dimension_numbers<[1], [0], [0], [1], [0, 0, 1, 1], [], []>} : vector<16x128xbf16>, vector<128x64xbf16>, vector<16x64xf32> -> vector<16x64xf32>
    %58 = vector.broadcast %55 : vector<1x64xf32> to vector<16x64xf32>
    %59 = arith.addf %57, %58 : vector<16x64xf32>
    %cst_33 = arith.constant 0.000000e+00 : f32
    %60 = vector.broadcast %cst_33 : f32 to vector<16x64xf32>
    %61 = arith.maximumf %59, %60 : vector<16x64xf32>
    %c576 = arith.constant 576 : index
    %c0_34 = arith.constant 0 : index
    %62 = vector.load %arg2[%c576, %c0_34] : memref<704x128xbf16, #tpu.memory_space<vmem>>, vector<64x32xbf16>
    %c8 = arith.constant 8 : index
    %c0_35 = arith.constant 0 : index
    %63 = vector.load %arg3[%c8, %c0_35] : memref<16x128xf32, #tpu.memory_space<vmem>>, vector<1x32xf32>
    %64 = arith.truncf %61 : vector<16x64xf32> to vector<16x64xbf16>
    %cst_36 = arith.constant dense<0.000000e+00> : vector<16x32xf32>
    %65 = tpu.matmul %64, %62, %cst_36 {dimension_numbers = #tpu.dot_dimension_numbers<[1], [0], [0], [1], [0, 0, 1, 1], [], []>} : vector<16x64xbf16>, vector<64x32xbf16>, vector<16x32xf32> -> vector<16x32xf32>
    %66 = vector.broadcast %63 : vector<1x32xf32> to vector<16x32xf32>
    %67 = arith.addf %65, %66 : vector<16x32xf32>
    %cst_37 = arith.constant 0.000000e+00 : f32
    %68 = vector.broadcast %cst_37 : f32 to vector<16x32xf32>
    %69 = arith.maximumf %67, %68 : vector<16x32xf32>
    %c640 = arith.constant 640 : index
    %c0_38 = arith.constant 0 : index
    %70 = vector.load %arg2[%c640, %c0_38] : memref<704x128xbf16, #tpu.memory_space<vmem>>, vector<32x16xbf16>
    %c9 = arith.constant 9 : index
    %c0_39 = arith.constant 0 : index
    %71 = vector.load %arg3[%c9, %c0_39] : memref<16x128xf32, #tpu.memory_space<vmem>>, vector<1x16xf32>
    %72 = arith.truncf %69 : vector<16x32xf32> to vector<16x32xbf16>
    %cst_40 = arith.constant dense<0.000000e+00> : vector<16x16xf32>
    %73 = tpu.matmul %72, %70, %cst_40 {dimension_numbers = #tpu.dot_dimension_numbers<[1], [0], [0], [1], [0, 0, 1, 1], [], []>} : vector<16x32xbf16>, vector<32x16xbf16>, vector<16x16xf32> -> vector<16x16xf32>
    %74 = vector.broadcast %71 : vector<1x16xf32> to vector<16x16xf32>
    %75 = arith.addf %73, %74 : vector<16x16xf32>
    %cst_41 = arith.constant 0.000000e+00 : f32
    %76 = vector.broadcast %cst_41 : f32 to vector<16x16xf32>
    %77 = arith.maximumf %75, %76 : vector<16x16xf32>
    %c672 = arith.constant 672 : index
    %c0_42 = arith.constant 0 : index
    %78 = vector.load %arg2[%c672, %c0_42] : memref<704x128xbf16, #tpu.memory_space<vmem>>, vector<16x4xbf16>
    %c10 = arith.constant 10 : index
    %c0_43 = arith.constant 0 : index
    %79 = vector.load %arg3[%c10, %c0_43] : memref<16x128xf32, #tpu.memory_space<vmem>>, vector<1x4xf32>
    %80 = arith.truncf %77 : vector<16x16xf32> to vector<16x16xbf16>
    %cst_44 = arith.constant dense<0.000000e+00> : vector<16x4xf32>
    %81 = tpu.matmul %80, %78, %cst_44 {dimension_numbers = #tpu.dot_dimension_numbers<[1], [0], [0], [1], [0, 0, 1, 1], [], []>} : vector<16x16xbf16>, vector<16x4xbf16>, vector<16x4xf32> -> vector<16x4xf32>
    %82 = vector.broadcast %79 : vector<1x4xf32> to vector<16x4xf32>
    %83 = arith.addf %81, %82 : vector<16x4xf32>
    %cst_45 = arith.constant dense<0xFF800000> : vector<16xf32>
    %84 = vector.multi_reduction <maximumf>, %83, %cst_45 [1] : vector<16x4xf32> to vector<16xf32>
    %85 = vector.shape_cast %84 : vector<16xf32> to vector<16x1xf32>
    %86 = vector.broadcast %85 : vector<16x1xf32> to vector<16x4xf32>
    %87 = arith.subf %83, %86 : vector<16x4xf32>
    %88 = math.exp %87 : vector<16x4xf32>
    %cst_46 = arith.constant dense<0.000000e+00> : vector<16xf32>
    %89 = vector.multi_reduction <add>, %88, %cst_46 [1] : vector<16x4xf32> to vector<16xf32>
    %90 = vector.shape_cast %89 : vector<16xf32> to vector<16x1xf32>
    %91 = tpu.reciprocal %90 {approx = true} : vector<16x1xf32> -> vector<16x1xf32>
    %92 = vector.broadcast %91 : vector<16x1xf32> to vector<16x4xf32>
    %93 = arith.mulf %88, %92 : vector<16x4xf32>
    %cst_47 = arith.constant 0.000000e+00 : f32
    %94 = vector.broadcast %cst_47 : f32 to vector<16x7xf32>
    %95 = tpu.concatenate %93, %1, %94 in 1 : vector<16x4xf32>, vector<16x5xf32>, vector<16x7xf32> -> vector<16x16xf32>
    %c688 = arith.constant 688 : index
    %c0_48 = arith.constant 0 : index
    %96 = vector.load %arg2[%c688, %c0_48] : memref<704x128xbf16, #tpu.memory_space<vmem>>, vector<16x2xbf16>
    %c11 = arith.constant 11 : index
    %c0_49 = arith.constant 0 : index
    %97 = vector.load %arg3[%c11, %c0_49] : memref<16x128xf32, #tpu.memory_space<vmem>>, vector<1x2xf32>
    %98 = arith.truncf %95 : vector<16x16xf32> to vector<16x16xbf16>
    %cst_50 = arith.constant dense<0.000000e+00> : vector<16x2xf32>
    %99 = tpu.matmul %98, %96, %cst_50 {dimension_numbers = #tpu.dot_dimension_numbers<[1], [0], [0], [1], [0, 0, 1, 1], [], []>} : vector<16x16xbf16>, vector<16x2xbf16>, vector<16x2xf32> -> vector<16x2xf32>
    %100 = vector.broadcast %97 : vector<1x2xf32> to vector<16x2xf32>
    %101 = arith.addf %99, %100 : vector<16x2xf32>
    %cst_51 = arith.constant 0.000000e+00 : f32
    %102 = vector.broadcast %cst_51 : f32 to vector<16x2xf32>
    %103 = arith.subf %102, %101 : vector<16x2xf32>
    %104 = math.exp %103 : vector<16x2xf32>
    %cst_52 = arith.constant 1.000000e+00 : f32
    %105 = vector.broadcast %cst_52 : f32 to vector<16x2xf32>
    %106 = arith.addf %105, %104 : vector<16x2xf32>
    %cst_53 = arith.constant 1.000000e+00 : f32
    %107 = vector.broadcast %cst_53 : f32 to vector<16x2xf32>
    %108 = arith.divf %107, %106 : vector<16x2xf32>
    %cst_54 = arith.constant 0.000000e+00 : f32
    %109 = vector.broadcast %cst_54 : f32 to vector<16x74xf32>
    %110 = tpu.concatenate %23, %53, %83, %108, %109 in 1 : vector<16x16xf32>, vector<16x32xf32>, vector<16x4xf32>, vector<16x2xf32>, vector<16x74xf32> -> vector<16x128xf32>
    %c0_55 = arith.constant 0 : index
    %c0_56 = arith.constant 0 : index
    %111 = vector.load %arg4[%c0_55, %c0_56] : memref<16x128xf32, #tpu.memory_space<vmem>>, vector<16x128xf32>
    tpu.vector_store %arg4[%c0_55, %c0_56], %110 {strides = array<i32>} : memref<16x128xf32, #tpu.memory_space<vmem>>, vector<16x128xf32>,
    return
  }
}

</mosaic_0001>

<bundles_post_ra>
// kernel: model2_forward.1
= control target key start
LH: loop header
LB: loop body
LE: loop exit
PB: predicated region body
PF: predicated region fallthrough
CT: control target
= control target key end

     0   :  { %9 = vsyncpa [#allocation3], 0  ;;  %s1438_s15 = smov [#allocation2]   ;;  %s1635_s0 = inlined_call_operand.vmem [shape: f32[16,32], index: 0, kind: input, shape index: {}]   ;;  %s1636_s1 = inlined_call_operand.vmem [shape: f32[16,5], index: 1, kind: input, shape index: {}]   ;;  %s1637_s2 = inlined_call_operand.hbm [shape: bf16[704,128], index: 2, kind: input, shape index: {}]   ;;  %s1638_s3 = inlined_call_operand.vmem [shape: f32[16,128], index: 3, kind: input, shape index: {}]   ;;  %s1639_s4 = inlined_call_operand.vmem [shape: f32[16,128], index: 4, kind: output, shape index: {}]  }
   0x1   :  { %s19_s16 = sshll.u32 %s1438_s15, 4  ;;  %s1414_s19 = scalar_lea.hbm %s1637_s2, 5632  ;;  %s20_s16 = int_to_ptr.vmem [resolvable:$true] %s19_s16 }
   0x2   :  { %p1415_p0 = scmp.ne.s32.totalorder %s1637_s2, %s1414_s19  ;;  %p1418_p1 = scmp.lt.u32.totalorder %s1414_s19, %s1637_s2 }
   0x4   :  { %p1420_p2 = pnand %p1418_p1, %p1415_p0 }
   0x6   :  { %1423 = shalt.err (!%p1420_p2)
}
   0x7   :  { %s1424_s24 = scalar_lea.vmem %s20_s16, 5632  ;;  %p1429_p4 = scmp.lt.s32.totalorder %s20_s16, %s20_s16 }
   0x8   :  { %p1425_p3 = scmp.ne.s32.totalorder %s20_s16, %s1424_s24  ;;  %p1430_p5 = scmp.lt.s32.totalorder %s1424_s24, %s1424_s24 }
   0xa   :  { %p1431_p6 = por %p1430_p5, %p1429_p4 }
   0xc   :  { %p1432_p7 = pnand %p1431_p6, %p1425_p3 }
   0xe   :  { %1435 = shalt.err (!%p1432_p7)
}
   0xf   :  { %s1439_s25 = smov 64   ;;  %s1440_s26 = smov 4  }
  0x10   :  { %25 = dma.hbm_to_vmem [thread:$0]  %s1637_s2, 5632, %s20_s16, [#allocation3], %s1439_s25, %s1439_s25, %s1440_s26  }
  0x11   :  { %1436 = dma.done.wait [#allocation3], 5632  }
  0x12   :  { %1437 = vsyncadd [#allocation3], 4294961664  ;;  %v1441_v0 = vmov 0.0   ;;  %vm1442_vm0 = vmmov 0   ;;  %v1354_v1 = vld [vmem:[#allocation2] sm:$0xff]   ;;  %v1355_v2 = vld [vmem:[#allocation2 + $0x8] sm:$0xff]  }
  0x13   :  { %1205 = vmatprep.subr.bf16.mxu0 %v1441_v0  ;;  %1209 = vmatprep.mubr.msk.bf16.mxu0 %vm1442_vm0, %v1441_v0  ;;  %v32_v3 = vld [vmem:[%s1635_s0] sm:$0xff]  ;;  %v33_v4 = vld [vmem:[%s1635_s0 + $0x8] sm:$0xff]  ;;  %v1356_v5 = vld [vmem:[#allocation2 + $0x10] sm:$0xff]   ;;  %vm58_vm1 = vcmask 261120   ;;  %vm256_vm2 = vcmask 523264   ;;  %vm315_vm3 = vcmask 130048  }
  0x14   :  { %1213 = vmatprep.subr.bf16.mxu1 %v1441_v0  ;;  %1229 = vmatprep.mubr.msk.bf16.mxu1 %vm1442_vm0, %v1441_v0  ;;  %v41_v6 = vpack.c.bf16 %v33_v4, %v32_v3  ;;  %v1357_v7 = vld [vmem:[#allocation2 + $0x18] sm:$0xff]   ;;  %v1358_v8 = vld [vmem:[#allocation2 + $0x20] sm:$0xff]   ;;  %v1359_v9 = vld [vmem:[#allocation2 + $0x28] sm:$0xff]   ;;  %vm936_vm4 = vcmask 31744   ;;  %s1443_s30 = smov 48   ;;  %s1444_s2 = smov 16  }
  0x15   :  { %1206 = vmatpush3.bf16.msra.mxu0 %v1354_v1  ;;  %1214 = vmatpush3.bf16.msra.mxu1 %v1356_v5  ;;  %v1360_v10 = vld [vmem:[#allocation2 + $0x30] sm:$0xff]   ;;  %v1361_v11 = vld [vmem:[#allocation2 + $0x38] sm:$0xff]   ;;  %v1362_v12 = vld [vmem:[#allocation2 + $0x40] sm:$0xff]   ;;  %vm969_vm5 = vcmask 72704   ;;  %vm1071_vm6 = vcmask 424960   ;;  %vm1068_vm7 = vcmask 392192  }
  0x16   :  { %1207 = vmatprep.subr.bf16.mxu0 %v1441_v0  ;;  %1215 = vmatprep.subr.bf16.mxu1 %v1441_v0  ;;  %v1363_v13 = vld [vmem:[#allocation2 + $0x48] sm:$0xff]   ;;  %v1364_v14 = vld [vmem:[#allocation2 + $0x50] sm:$0xff]   ;;  %v1365_v15 = vld [vmem:[#allocation2 + $0x58] sm:$0xff]   ;;  %vm1074_vm8 = vcmask 441344  }
  0x17   :  { %v1084_v16 = vld [vmem:[%s1638_s3] ss:$0 sm:$0xff]  ;;  %v1367_v27 = vld [vmem:[#allocation2 + $0x68] sm:$0xff]   ;;  %v1088_v28 = vld [vmem:[%s1638_s3 + $0x1] ss:$0 sm:$0xff] }
  0x18   :  { %v1366_v26 = vld [vmem:[#allocation2 + $0x60] sm:$0xff]   ;;  %v1368_v37 = vld [vmem:[#allocation2 + $0x70] sm:$0xff]   ;;  %v1369_v46 = vld [vmem:[#allocation2 + $0x78] sm:$0xff]  }
  0x19   :  { %1208 = vmatpush3.bf16.msra.mxu0 %v1355_v2  ;;  %1216 = vmatpush3.bf16.msra.mxu1 %v1357_v7  ;;  %v1097_v39 = vld [vmem:[%s1638_s3 + $0x2] ss:$0 sm:$0xff]  ;;  %v1371_v49 = vld [vmem:[#allocation2 + $0x88] sm:$0xff]   ;;  %v1372_v50 = vld [vmem:[#allocation2 + $0x90] sm:$0xff]  }
  0x1a   :  { %1233 = vmatprep.subr.bf16.mxu0 %v1441_v0  ;;  %1217 = vmatprep.subr.bf16.mxu1 %v1441_v0  ;;  %v1370_v48 = vld [vmem:[#allocation2 + $0x80] sm:$0xff]   ;;  %v1373_v51 = vld [vmem:[#allocation2 + $0x98] sm:$0xff]   ;;  %v1383_v53 = vld [vmem:[#allocation2 + $0xa8] sm:$0xff]  }
  0x1b   :  { %v1382_v52 = vld [vmem:[#allocation2 + $0xa0] sm:$0xff]   ;;  %v1384_v54 = vld [vmem:[#allocation2 + $0xb0] sm:$0xff]   ;;  %v1385_v55 = vld [vmem:[#allocation2 + $0xb8] sm:$0xff]  }
  0x1c   :  { %1210 = vmatmul.mubr.msk.bf16.vlgmr.msra.gmra.mrb[0].mxu0 %vm58_vm1, %v41_v6  ;;  %v1386_v56 = vld [vmem:[#allocation2 + $0xc0] sm:$0xff]   ;;  %v1387_v57 = vld [vmem:[#allocation2 + $0xc8] sm:$0xff]  }
  0x1d   :  { %1241 = vmatprep.mubr.msk.bf16.mxu0 %vm1442_vm0, %v1441_v0  ;;  %1218 = vmatpush3.bf16.msra.mxu1 %v1358_v8  ;;  %v1103_v58 = vld [vmem:[%s1638_s3 + $0x3] ss:$0 sm:$0xff]  ;;  %v1106_v4 = vld [vmem:[%s1638_s3 + $0x4] ss:$0 sm:$0xff] }
  0x1e   :  { %1219 = vmatprep.subr.bf16.mxu1 %v1441_v0  ;;  %1234 = vmatpush3.bf16.msra.mxu0 %v1364_v14  ;;  %v1374_v14 = vld [vmem:[#allocation2 + $0xe0] sm:$0xff]  }
  0x1f   :  { %1235 = vmatprep.subr.bf16.mxu0 %v1441_v0 }
  0x21   :  { %1220 = vmatpush3.bf16.msra.mxu1 %v1359_v9 }
  0x22   :  { %1221 = vmatprep.subr.bf16.mxu1 %v1441_v0  ;;  %1236 = vmatpush3.bf16.msra.mxu0 %v1365_v15 }
  0x23   :  { %1237 = vmatprep.subr.bf16.mxu0 %v1441_v0 }
  0x25   :  { %1222 = vmatpush3.bf16.msra.mxu1 %v1360_v10 }
  0x26   :  { %1223 = vmatprep.subr.bf16.mxu1 %v1441_v0  ;;  %1238 = vmatpush3.bf16.msra.mxu0 %v1366_v26 }
  0x27   :  { %1239 = vmatprep.subr.bf16.mxu0 %v1441_v0 }
  0x29   :  { %1224 = vmatpush3.bf16.msra.mxu1 %v1361_v11 }
  0x2a   :  { %1225 = vmatprep.subr.bf16.mxu1 %v1441_v0  ;;  %1240 = vmatpush3.bf16.msra.mxu0 %v1367_v27 }
  0x2b   :  { %1245 = vmatprep.subr.bf16.mxu0 %v1441_v0 }
  0x2d   :  { %1226 = vmatpush3.bf16.msra.mxu1 %v1362_v12 }
  0x2e   :  { %1227 = vmatprep.subr.bf16.mxu1 %v1441_v0 }
  0x31   :  { %1228 = vmatpush3.bf16.msra.mxu1 %v1363_v13 }
  0x32   :  { %1257 = vmatprep.subr.bf16.mxu1 %v1441_v0 }
  0xef   :  { %v96_v17 = vpop.f32.mrb[0].mxu0 }
  0xf0   :  { %v97_v18 = vadd.f32 %v1084_v16, %v96_v17  ;;  %v1211_v19 = vpop.f32.mrb[1].mxu0  ;;  %v1376_v17 = vld [vmem:[#allocation2 + $0xf0] sm:$0xff]  }
  0xf1   :  { %v99_v20 = vpop.f32.mrb[2].mxu0  ;;  %v1378_v19 = vld [vmem:[#allocation2 + $0x100] sm:$0xff]  }
  0xf2   :  { %v100_v21 = vadd.f32 %v1084_v16, %v99_v20  ;;  %v1212_v22 = vpop.f32.mrb[3].mxu0  ;;  %v103_v23 = vmax.f32 %v97_v18, 0.0  ;;  %v1375_v16 = vld [vmem:[#allocation2 + $0xe8] sm:$0xff]   ;;  %v1377_v18 = vld [vmem:[#allocation2 + $0xf8] sm:$0xff]  }
  0xf3   :  { %v1379_v20 = vld [vmem:[#allocation2 + $0x108] sm:$0xff]   ;;  %v1381_v22 = vld [vmem:[#allocation2 + $0x118] sm:$0xff]  }
  0xf4   :  { %v104_v24 = vmax.f32 %v100_v21, 0.0  ;;  %v1380_v21 = vld [vmem:[#allocation2 + $0x110] sm:$0xff]  }
  0xf6   :  { %v122_v25 = vpack.c.bf16 %v104_v24, %v103_v23  ;;  %v1388_v23 = vld [vmem:[#allocation2 + $0xd0] sm:$0xff]   ;;  %v1389_v24 = vld [vmem:[#allocation2 + $0xd8] sm:$0xff]  }
  0xf8   :  { %1230 = vmatmul.mubr.bf16.vlgmr.msra.gmra.mrb[0].mxu1 %v122_v25  ;;  %v1109_v25 = vld [vmem:[%s1638_s3 + $0x5] ss:$0 sm:$0xff] }
  0xf9   :  { %1265 = vmatprep.mubr.msk.bf16.mxu1 %vm1442_vm0, %v1441_v0  ;;  %1258 = vmatpush3.bf16.msra.mxu1 %v1370_v48 }
  0xfa   :  { %1259 = vmatprep.subr.bf16.mxu1 %v1441_v0 }
  0xfd   :  { %1260 = vmatpush3.bf16.msra.mxu1 %v1371_v49 }
  0xfe   :  { %1261 = vmatprep.subr.bf16.mxu1 %v1441_v0 }
 0x101   :  { %1262 = vmatpush3.bf16.msra.mxu1 %v1372_v50 }
 0x102   :  { %1263 = vmatprep.subr.bf16.mxu1 %v1441_v0 }
 0x105   :  { %1264 = vmatpush3.bf16.msra.mxu1 %v1373_v51  ;;  %v1394_v51 = vld [vmem:[#allocation2 + $0x140] sm:$0xff]  }
 0x106   :  { %1289 = vmatprep.subr.bf16.mxu1 %v1441_v0 }
 0x1cb   :  { %v209_v29 = vpop.f32.mrb[0].mxu1 }
 0x1cc   :  { %v210_v30 = vadd.f32 %v1088_v28, %v209_v29  ;;  %v1231_v31 = vpop.f32.mrb[1].mxu1 }
 0x1cd   :  { %v212_v32 = vpop.f32.mrb[2].mxu1 }
 0x1ce   :  { %v213_v33 = vadd.f32 %v1088_v28, %v212_v32  ;;  %v1232_v34 = vpop.f32.mrb[3].mxu1  ;;  %v216_v35 = vmax.f32 %v210_v30, 0.0 }
 0x1cf   :  { %v1390_v34 = vld [vmem:[#allocation2 + $0x120] sm:$0xff]  }
 0x1d0   :  { %v217_v36 = vmax.f32 %v213_v33, 0.0 }
 0x1d2   :  { %v227_v38 = vpack.c.bf16 %v217_v36, %v216_v35  ;;  %v1391_v36 = vld [vmem:[#allocation2 + $0x128] sm:$0xff]  }
 0x1d4   :  { %1242 = vmatmul.mubr.msk.bf16.vlgmr.msra.gmra.mrb[4].mxu0 %vm256_vm2, %v227_v38  ;;  %v1393_v38 = vld [vmem:[#allocation2 + $0x138] sm:$0xff]  }
 0x1d5   :  { %1246 = vmatpush3.bf16.msra.mxu0 %v1368_v37  ;;  %1247 = vmatprep.mubr.msk.bf16.mxu0 %vm1442_vm0, %v1441_v0  ;;  %v1392_v37 = vld [vmem:[#allocation2 + $0x130] sm:$0xff]  }
 0x1d6   :  { %1251 = vmatprep.subr.bf16.mxu0 %v1441_v0 }
 0x2a7   :  { %v294_v40 = vpop.f32.mrb[4].mxu0 }
 0x2a8   :  { %v1243_v41 = vpop.f32.mrb[5].mxu0  ;;  %v1528_v43 = vadd.f32 %v1097_v39, %v294_v40 }
 0x2a9   :  { %v297_v42 = vpop.f32.mrb[6].mxu0 }
 0x2aa   :  { %v1530_v44 = vadd.f32 %v1097_v39, %v297_v42  ;;  %v1244_v45 = vpop.f32.mrb[7].mxu0  ;;  %v1124_v39 = vld [vmem:[%s1638_s3 + $0x7] ss:$0 sm:$0xff] }
 0x2ac   :  { %v304_v47 = vpack.c.bf16 %v1530_v44, %v1528_v43 }
 0x2ae   :  { %1248 = vmatmul.mubr.msk.bf16.vlgmr.msra.gmra.mrb[8].mxu0 %vm315_vm3, %v304_v47 }
 0x2af   :  { %1252 = vmatpush3.bf16.msra.mxu0 %v1369_v46  ;;  %1253 = vmatprep.mubr.msk.bf16.mxu0 %vm1442_vm0, %v1441_v0 }
 0x2b0   :  { %1269 = vmatprep.subr.bf16.mxu0 %v1441_v0 }
 0x2b6   :  { %1254 = vmatmul.mubr.msk.bf16.vlgmr.msra.gmra.mrb[12].mxu0 %vm315_vm3, %v304_v47 }
 0x2b7   :  { %1285 = vmatprep.mubr.msk.bf16.mxu0 %vm1442_vm0, %v1441_v0  ;;  %1270 = vmatpush3.bf16.msra.mxu0 %v1382_v52  ;;  %v1395_v52 = vld [vmem:[#allocation2 + $0x148] sm:$0xff]  }
 0x2b8   :  { %1271 = vmatprep.subr.bf16.mxu0 %v1441_v0 }
 0x2bb   :  { %1272 = vmatpush3.bf16.msra.mxu0 %v1383_v53 }
 0x2bc   :  { %1273 = vmatprep.subr.bf16.mxu0 %v1441_v0 }
 0x2bf   :  { %1274 = vmatpush3.bf16.msra.mxu0 %v1384_v54 }
 0x2c0   :  { %1275 = vmatprep.subr.bf16.mxu0 %v1441_v0 }
 0x2c3   :  { %1276 = vmatpush3.bf16.msra.mxu0 %v1385_v55 }
 0x2c4   :  { %1277 = vmatprep.subr.bf16.mxu0 %v1441_v0 }
 0x2c7   :  { %1278 = vmatpush3.bf16.msra.mxu0 %v1386_v56 }
 0x2c8   :  { %1279 = vmatprep.subr.bf16.mxu0 %v1441_v0 }
 0x2cb   :  { %1280 = vmatpush3.bf16.msra.mxu0 %v1387_v57  ;;  %v1133_v57 = vld [vmem:[%s1638_s3 + $0x8] ss:$0 sm:$0xff] }
 0x2cc   :  { %1281 = vmatprep.subr.bf16.mxu0 %v1441_v0 }
 0x2cf   :  { %1282 = vmatpush3.bf16.msra.mxu0 %v1388_v23  ;;  %v34_v23 = vld [vmem:[%s1636_s1] sm:$0xff] }
 0x2d0   :  { %1283 = vmatprep.subr.bf16.mxu0 %v1441_v0 }
 0x2d3   :  { %1284 = vmatpush3.bf16.msra.mxu0 %v1389_v24  ;;  %v35_v24 = vld [vmem:[%s1636_s1 + $0x8] sm:$0xff] }
 0x2d4   :  { %1309 = vmatprep.subr.bf16.mxu0 %v1441_v0 }
 0x381   :  { %v353_v59 = vpop.f32.mrb[8].mxu0 }
 0x382   :  { %v354_v60 = vadd.f32 %v1103_v58, %v353_v59  ;;  %v1249_v61 = vpop.f32.mrb[9].mxu0 }
 0x383   :  { %v356_v62 = vpop.f32.mrb[10].mxu0 }
 0x384   :  { %v357_v63 = vadd.f32 %v1103_v58, %v356_v62  ;;  %v1250_v1 = vpop.f32.mrb[11].mxu0  ;;  %v360_v2 = vmax.f32 %v354_v60, 0.0 }
 0x386   :  { %v361_v3 = vmax.f32 %v357_v63, 0.0 }
 0x388   :  { %v630_v5 = vpack.c.bf16 %v361_v3, %v360_v2 }
 0x389   :  { %v409_v6 = vpop.f32.mrb[12].mxu0 }
 0x38a   :  { %v410_v7 = vadd.f32 %v1106_v4, %v409_v6  ;;  %v1255_v8 = vpop.f32.mrb[13].mxu0 }
 0x38b   :  { %v412_v9 = vpop.f32.mrb[14].mxu0 }
 0x38c   :  { %v413_v10 = vadd.f32 %v1106_v4, %v412_v9  ;;  %v1256_v11 = vpop.f32.mrb[15].mxu0  ;;  %v416_v12 = vmax.f32 %v410_v7, 0.0  ;;  %v1396_v4 = vld [vmem:[#allocation2 + $0x150] sm:$0xff]  }
 0x38e   :  { %v417_v13 = vmax.f32 %v413_v10, 0.0 }
 0x390   :  { %v427_v15 = vpack.c.bf16 %v417_v13, %v416_v12 }
 0x392   :  { %1266 = vmatmul.mubr.msk.bf16.vlgmr.msra.gmra.mrb[4].mxu1 %vm256_vm2, %v427_v15 }
 0x393   :  { %1290 = vmatpush3.bf16.msra.mxu1 %v1374_v14  ;;  %1305 = vmatprep.mubr.msk.bf16.mxu1 %vm1442_vm0, %v1441_v0 }
 0x394   :  { %1291 = vmatprep.subr.bf16.mxu1 %v1441_v0 }
 0x397   :  { %1292 = vmatpush3.bf16.msra.mxu1 %v1375_v16 }
 0x398   :  { %1293 = vmatprep.subr.bf16.mxu1 %v1441_v0 }
 0x39b   :  { %1294 = vmatpush3.bf16.msra.mxu1 %v1376_v17 }
 0x39c   :  { %1295 = vmatprep.subr.bf16.mxu1 %v1441_v0 }
 0x39f   :  { %1296 = vmatpush3.bf16.msra.mxu1 %v1377_v18 }
 0x3a0   :  { %1297 = vmatprep.subr.bf16.mxu1 %v1441_v0 }
 0x3a3   :  { %1298 = vmatpush3.bf16.msra.mxu1 %v1378_v19 }
 0x3a4   :  { %1299 = vmatprep.subr.bf16.mxu1 %v1441_v0 }
 0x3a7   :  { %1300 = vmatpush3.bf16.msra.mxu1 %v1379_v20 }
 0x3a8   :  { %1301 = vmatprep.subr.bf16.mxu1 %v1441_v0 }
 0x3ab   :  { %1302 = vmatpush3.bf16.msra.mxu1 %v1380_v21 }
 0x3ac   :  { %1303 = vmatprep.subr.bf16.mxu1 %v1441_v0 }
 0x3af   :  { %1304 = vmatpush3.bf16.msra.mxu1 %v1381_v22 }
 0x3b0   :  { %1321 = vmatprep.subr.bf16.mxu1 %v1441_v0 }
 0x3b2   :  { %1306 = vmatmul.mubr.bf16.vlgmr.msra.gmra.mrb[8].mxu1 %v630_v5  ;;  %v1139_v5 = vld [vmem:[%s1638_s3 + $0x9] ss:$0 sm:$0xff] }
 0x3b3   :  { %1325 = vmatprep.mubr.msk.bf16.mxu1 %vm1442_vm0, %v1441_v0  ;;  %1322 = vmatpush3.bf16.msra.mxu1 %v1394_v51 }
 0x3b4   :  { %1323 = vmatprep.subr.bf16.mxu1 %v1441_v0 }
 0x3b7   :  { %1324 = vmatpush3.bf16.msra.mxu1 %v1395_v52 }
 0x3b8   :  { %1335 = vmatprep.subr.bf16.mxu1 %v1441_v0 }
 0x465   :  { %v493_v26 = vpop.f32.mrb[4].mxu1 }
 0x466   :  { %v494_v27 = vadd.f32 %v1109_v25, %v493_v26  ;;  %v1267_v28 = vpop.f32.mrb[5].mxu1 }
 0x467   :  { %v496_v29 = vpop.f32.mrb[6].mxu1 }
 0x468   :  { %v497_v30 = vadd.f32 %v1109_v25, %v496_v29  ;;  %v1268_v31 = vpop.f32.mrb[7].mxu1  ;;  %v500_v32 = vmax.f32 %v494_v27, 0.0  ;;  %v1349_v25 = vpack.i.bf16 %v35_v24, %v34_v23 }
 0x46a   :  { %v501_v33 = vmax.f32 %v497_v30, 0.0 }
 0x46c   :  { %v519_v35 = vpack.c.bf16 %v501_v33, %v500_v32 }
 0x46e   :  { %1286 = vmatmul.mubr.bf16.vlgmr.msra.gmra.mrb[16].mxu0 %v519_v35 }
 0x46f   :  { %1310 = vmatpush3.bf16.msra.mxu0 %v1390_v34  ;;  %1317 = vmatprep.mubr.msk.bf16.mxu0 %vm1442_vm0, %v1441_v0 }
 0x470   :  { %1311 = vmatprep.subr.bf16.mxu0 %v1441_v0 }
 0x473   :  { %1312 = vmatpush3.bf16.msra.mxu0 %v1391_v36  ;;  %v1115_v36 = vld [vmem:[%s1638_s3 + $0x6] ss:$0 sm:$0xff] }
 0x474   :  { %1313 = vmatprep.subr.bf16.mxu0 %v1441_v0 }
 0x477   :  { %1314 = vmatpush3.bf16.msra.mxu0 %v1392_v37 }
 0x478   :  { %1315 = vmatprep.subr.bf16.mxu0 %v1441_v0 }
 0x47b   :  { %1316 = vmatpush3.bf16.msra.mxu0 %v1393_v38 }
 0x47c   :  { %1329 = vmatprep.subr.bf16.mxu0 %v1441_v0 }
 0x485   :  { %v717_v40 = vpop.f32.mrb[8].mxu1 }
 0x486   :  { %v718_v41 = vadd.f32 %v1124_v39, %v717_v40  ;;  %v1307_v42 = vpop.f32.mrb[9].mxu1 }
 0x487   :  { %v720_v45 = vpop.f32.mrb[10].mxu1 }
 0x488   :  { %v721_v46 = vadd.f32 %v1124_v39, %v720_v45  ;;  %v1308_v47 = vpop.f32.mrb[11].mxu1  ;;  %v724_v48 = vmax.f32 %v718_v41, 0.0  ;;  %v1397_v39 = vld [vmem:[#allocation2 + $0x158] sm:$0xff]  }
 0x48a   :  { %v725_v49 = vmax.f32 %v721_v46, 0.0 }
 0x48c   :  { %v735_v50 = vpack.c.bf16 %v725_v49, %v724_v48 }
 0x48e   :  { %1318 = vmatmul.mubr.msk.bf16.vlgmr.msra.gmra.mrb[20].mxu0 %vm256_vm2, %v735_v50 }
 0x48f   :  { %1331 = vmatprep.mubr.msk.bf16.mxu0 %vm1442_vm0, %v1441_v0  ;;  %1330 = vmatpush3.bf16.msra.mxu0 %v1396_v4 }
 0x541   :  { %v606_v53 = vpop.f32.mrb[16].mxu0 }
 0x542   :  { %v1287_v54 = vpop.f32.mrb[17].mxu0  ;;  %v607_v37 = vadd.f32 %v1115_v36, %v606_v53 }
 0x543   :  { %v1589_v55 = vpop.f32.mrb[18].mxu0 }
 0x544   :  { %v1288_v56 = vpop.f32.mrb[19].mxu0  ;;  %v610_v38 = vadd.f32 %v1115_v36, %v1589_v55 }
 0x545   :  { %v1146_v56 = vld [vmem:[%s1638_s3 + $0xb] ss:$0 sm:$0xff] }
 0x561   :  { %v801_v58 = vpop.f32.mrb[20].mxu0 }
 0x562   :  { %v802_v59 = vadd.f32 %v1133_v57, %v801_v58  ;;  %v1319_v60 = vpop.f32.mrb[21].mxu0 }
 0x563   :  { %v804_v61 = vpop.f32.mrb[22].mxu0 }
 0x564   :  { %v805_v62 = vadd.f32 %v1133_v57, %v804_v61  ;;  %v1320_v63 = vpop.f32.mrb[23].mxu0  ;;  %v808_v1 = vmax.f32 %v802_v59, 0.0 }
 0x566   :  { %v809_v2 = vmax.f32 %v805_v62, 0.0 }
 0x568   :  { %v815_v3 = vpack.c.bf16 %v809_v2, %v808_v1 }
 0x56a   :  { %1326 = vmatmul.mubr.msk.bf16.vlgmr.msra.gmra.mrb[12].mxu1 %vm58_vm1, %v815_v3 }
 0x56b   :  { %1337 = vmatprep.mubr.msk.bf16.mxu1 %vm1442_vm0, %v1441_v0  ;;  %v1143_v0 = vld [vmem:[%s1638_s3 + $0xa] ss:$0 sm:$0xff]  ;;  %1336 = vmatpush3.bf16.msra.mxu1 %v1397_v39  ;;  %s1445_s3 = smov 52  }
 0x63d   :  { %v869_v6 = vpop.f32.mrb[12].mxu1 }
 0x63e   :  { %v870_v7 = vadd.f32 %v1139_v5, %v869_v6  ;;  %v1327_v8 = vpop.f32.mrb[13].mxu1 }
 0x63f   :  { %v872_v9 = vpop.f32.mrb[14].mxu1 }
 0x640   :  { %v873_v10 = vadd.f32 %v1139_v5, %v872_v9  ;;  %v1328_v11 = vpop.f32.mrb[15].mxu1  ;;  %v876_v12 = vmax.f32 %v870_v7, 0.0 }
 0x642   :  { %v877_v13 = vmax.f32 %v873_v10, 0.0 }
 0x644   :  { %v881_v14 = vpack.c.bf16 %v877_v13, %v876_v12 }
 0x646   :  { %1332 = vmatmul.mubr.msk.bf16.vlgmr.msra.gmra.mrb[24].mxu0 %vm315_vm3, %v881_v14 }
 0x719   :  { %v929_v15 = vpop.f32.mrb[24].mxu0 }
 0x71a   :  { %v930_v16 = vadd.f32 %v1143_v0, %v929_v15  ;;  %v1333_v17 = vpop.f32.mrb[25].mxu0 }
 0x71b   :  { %v932_v18 = vpop.f32.mrb[26].mxu0 }
 0x71c   :  { %v933_v19 = vadd.f32 %v1143_v0, %v932_v18  ;;  %v1334_v20 = vpop.f32.mrb[27].mxu0  ;;  %v937_v21 = vsel %vm936_vm4, %v930_v16, -inf }
 0x71d   :  { %938 = vmax.xlane.f32.xlu0 %v937_v21 }
 0x71e   :  { %v940_v22 = vsel %vm936_vm4, %v933_v19, -inf }
 0x721   :  { %941 = vmax.xlane.f32.xlu0 %v940_v22 }
 0x737   :  { %1350 = vrot.lane.b32.xlu0 %v1349_v25, %s1440_s26 }
 0x73b   :  { %1054 = vrot.lane.b32.xlu0 %v933_v19, %s1443_s30 }
 0x7aa   :  { %v939_v26 = vpop.xlane.xlu0 %938 }
 0x7ab   :  { %v943_v27 = vsub.f32 %v930_v16, %v939_v26 }
 0x7ad   :  { %v945_v28 = vmul.f32 1.442695, %v943_v27 }
 0x7ae   :  { %v942_v29 = vpop.xlane.xlu0 %941 }
 0x7af   :  { %1398 = vpow2.f32 %v945_v28  ;;  %v944_v30 = vsub.f32 %v933_v19, %v942_v29 }
 0x7b1   :  { %v947_v31 = vmul.f32 1.442695, %v944_v30 }
 0x7b2   :  { %v1351_v45 = vpop.permute.xlu0 %1350 }
 0x7b3   :  { %1400 = vpow2.f32 %v947_v31  ;;  %v1352_v46 = vunpack.i.l.bf16 %v1351_v45  ;;  %v1353_v48 = vunpack.i.h.bf16 %v1351_v45 }
 0x7b6   :  { %v1055_v13 = vpop.permute.xlu0 %1054 }
 0x7b9   :  { %v1399_v32 = vpop.eup %1398 }
 0x7ba   :  { %v949_v33 = vsel %vm936_vm4, %v1399_v32, 0.0 }
 0x7bb   :  { %950 = vadd.xlane.f32.xlu1 %v949_v33 }
 0x7bd   :  { %v1401_v34 = vpop.eup %1400 }
 0x7be   :  { %v952_v35 = vsel %vm936_vm4, %v1401_v34, 0.0 }
 0x7bf   :  { %953 = vadd.xlane.f32.xlu1 %v952_v35 }
 0x7d0   :  { %1044 = vrot.lane.b32.xlu1 %v607_v37, %s1444_s2 }
 0x7d4   :  { %1046 = vrot.lane.b32.xlu1 %v610_v38, %s1444_s2 }
 0x7d8   :  { %1052 = vrot.lane.b32.xlu1 %v930_v16, %s1443_s30 }
 0x848   :  { %v951_v40 = vpop.xlane.xlu1 %950 }
 0x849   :  { %1402 = vrcp.f32 %v951_v40 }
 0x84c   :  { %v954_v41 = vpop.xlane.xlu1 %953 }
 0x84d   :  { %1404 = vrcp.f32 %v954_v41 }
 0x850   :  { %v1045_v10 = vpop.permute.xlu1 %1044 }
 0x851   :  { %v1066_v14 = vsel %vm315_vm3, %v1528_v43, %v1045_v10 }
 0x853   :  { %v1403_v42 = vpop.eup %1402 }
 0x854   :  { %v957_v47 = vmul.f32 %v1403_v42, %v1399_v32  ;;  %v1047_v11 = vpop.permute.xlu1 %1046 }
 0x855   :  { %v1067_v0 = vsel %vm315_vm3, %v1530_v44, %v1047_v11 }
 0x856   :  { %v967_v51 = vsel %vm936_vm4, %v957_v47, %v1352_v46  ;;  %v1070_v19 = vsel %vm1068_vm7, %v1067_v0, %v1055_v13 }
 0x857   :  { %v1405_v49 = vpop.eup %1404  ;;  %v970_v53 = vsel %vm969_vm5, %v967_v51, 0.0 }
 0x858   :  { %v958_v50 = vmul.f32 %v1405_v49, %v1401_v34  ;;  %v1053_v12 = vpop.permute.xlu1 %1052 }
 0x859   :  { %v1069_v15 = vsel %vm1068_vm7, %v1066_v14, %v1053_v12 }
 0x85a   :  { %v968_v52 = vsel %vm936_vm4, %v958_v50, %v1353_v48 }
 0x85b   :  { %v971_v54 = vsel %vm969_vm5, %v968_v52, 0.0 }
 0x85c   :  { %v975_v55 = vpack.c.bf16 %v971_v54, %v970_v53 }
 0x85e   :  { %1338 = vmatmul.mubr.msk.bf16.vlgmr.msra.gmra.mrb[16].mxu1 %vm315_vm3, %v975_v55 }
 0x931   :  { %v1023_v57 = vpop.f32.mrb[16].mxu1 }
 0x932   :  { %v1024_v58 = vadd.f32 %v1146_v56, %v1023_v57  ;;  %v1339_v59 = vpop.f32.mrb[17].mxu1 }
 0x933   :  { %v1026_v60 = vpop.f32.mrb[18].mxu1 }
 0x934   :  { %v1030_v61 = vsub.f32 0.0, %v1024_v58  ;;  %v1027_v62 = vadd.f32 %v1146_v56, %v1026_v60  ;;  %v1340_v63 = vpop.f32.mrb[19].mxu1 }
 0x936   :  { %v1032_v1 = vmul.f32 1.442695, %v1030_v61  ;;  %v1031_v2 = vsub.f32 0.0, %v1027_v62 }
 0x938   :  { %1406 = vpow2.f32 %v1032_v1  ;;  %v1034_v3 = vmul.f32 1.442695, %v1031_v2 }
 0x93a   :  { %1408 = vpow2.f32 %v1034_v3 }
 0x942   :  { %v1407_v4 = vpop.eup %1406 }
 0x943   :  { %v1036_v5 = vadd.f32 1.0, %v1407_v4 }
 0x944   :  { %v1409_v6 = vpop.eup %1408 }
 0x945   :  { %1410 = vrcp.f32 %v1036_v5  ;;  %v1037_v7 = vadd.f32 1.0, %v1409_v6 }
 0x947   :  { %1412 = vrcp.f32 %v1037_v7 }
 0x94f   :  { %v1411_v8 = vpop.eup %1410 }
 0x950   :  { %1060 = vrot.lane.b32.xlu1 %v1411_v8, %s1445_s3 }
 0x951   :  { %v1413_v9 = vpop.eup %1412 }
 0x952   :  { %1062 = vrot.lane.b32.xlu0 %v1413_v9, %s1445_s3 }
 0x9c2   :  { %v1061_v16 = vpop.permute.xlu1 %1060 }
 0x9c3   :  { %v1072_v17 = vsel %vm1071_vm6, %v1069_v15, %v1061_v16 }
 0x9c4   :  { %v1075_v18 = vsel %vm1074_vm8, %v1072_v17, 0.0  ;;  %v1063_v20 = vpop.permute.xlu0 %1062 }
 0x9c5   :  { %1077 = vst [vmem:[%s1639_s4] sm:$0xff] %v1075_v18  ;;  %v1073_v21 = vsel %vm1071_vm6, %v1070_v19, %v1063_v20 }
 0x9c6   :  { %v1076_v22 = vsel %vm1074_vm8, %v1073_v21, 0.0 }
 0x9c7   :  { %1078 = vst [vmem:[%s1639_s4 + $0x8] sm:$0xff] %v1076_v22 }
 0x9c8   :  { %1083 = vsyncpa [#allocation3], 1 }

</bundles_post_ra>
